<compile_context>
chip_gen: v7x
topology: tpu7x:2x2x1
jax: 0.10.0
libtpu: 0.0.40
codegen_flags: <defaults>
</compile_context>

<pallas_src>
import jax
import jax.numpy as jnp
from jax import lax
from jax.experimental import pallas as pl
from jax.experimental.pallas import tpu as pltpu


def _make_kernel(rhs_contract_dim):
    """Single-matmul kernel: y = relu(x_tile . W_b), f32 accumulation."""

    def kernel(w_ref, x_ref, o_ref):
        # w_ref: (1, Dw0, Dw1)   per-batch weight (plain W or kron-folded K)
        # x_ref: (1, TN, Din)    per-(n-tile, batch) slab of x
        # o_ref: (1, TN, Dlane)
        y = lax.dot_general(
            x_ref[0],
            w_ref[0],
            (((1,), (rhs_contract_dim,)), ((), ())),
            preferred_element_type=jnp.float32,
        )
        o_ref[0] = jnp.maximum(y, 0.0).astype(o_ref.dtype)

    return kernel


def _choose_tn(n_rows, bytes_per_row, tn_max, budget_bytes):
    tn = min(n_rows, tn_max)
    if tn < n_rows:                       # tiling -> keep tn a multiple of 8
        tn = max(8, (tn // 8) * 8)
    while tn > 8 and tn * bytes_per_row > budget_bytes:
        tn = max(8, ((tn // 2) // 8) * 8)
    return tn


def lowrank_inr_layer(x, v_mat, u_weight, *, tn_max=8192, io_dtype=None):
    """x: (B, N, dim_in), v_mat: (B, rank, dim_in), u_weight: (dim_out, rank)."""
    B, N, dim_in = x.shape
    dim_out, rank = u_weight.shape
    assert v_mat.shape == (B, rank, dim_in)

    io_dtype = jnp.dtype(io_dtype) if io_dtype is not None else x.dtype

    # Per-batch dense weight, built once wrapper-side in f32 (tiny vs. x): W_b = U @ V_b.
    w = jnp.einsum(
        "dr,bri->bdi",
        u_weight.astype(jnp.float32),
        v_mat.astype(jnp.float32),
    )  # (B, dim_out, dim_in)

    # Lane-folding factor: pack f consecutive N rows into one 128-lane output row.
    fold = 1
    if 0 < dim_out < 128 and 128 % dim_out == 0 and N % (128 // dim_out) == 0:
        fold = 128 // dim_out

    if fold > 1:
        n_rows = N // fold
        d_in_k = fold * dim_in
        d_lane = fold * dim_out            # == 128
        # Free row-major view of x: (B, N, di) -> (B, N/f, f*di).
        x_k = x.reshape(B, n_rows, d_in_k).astype(io_dtype)
        # Block-diagonal weight K_b = kron(I_f, W_b^T): (f*di, f*do).
        eye = jnp.eye(fold, dtype=jnp.float32)
        k = eye[None, :, None, :, None] * w.transpose(0, 2, 1)[:, None, :, None, :]
        w_k = k.reshape(B, d_in_k, d_lane).astype(io_dtype)
        rhs_contract = 0                   # contract x dim 1 with K dim 0
    else:
        n_rows = N
        d_in_k = dim_in
        d_lane = dim_out                   # block last dim == full array dim (allowed)
        x_k = x.astype(io_dtype)
        w_k = w.astype(io_dtype)
        rhs_contract = 1                   # contract x dim 1 with W dim 1 (no transpose)

    # N-tile size: double-buffered x + out tiles under a conservative budget
    # (well inside v7x's 32 MiB scoped default / 64 MiB physical VMEM).
    itemsize = jnp.dtype(io_dtype).itemsize
    bytes_per_row = 2 * (d_in_k + d_lane) * itemsize
    tn = _choose_tn(n_rows, bytes_per_row, tn_max, budget_bytes=16 << 20)
    n_tiles = pl.cdiv(n_rows, tn)

    out = pl.pallas_call(
        _make_kernel(rhs_contract),
        out_shape=jax.ShapeDtypeStruct((B, n_rows, d_lane), io_dtype),
        grid_spec=pltpu.PrefetchScalarGridSpec(
            num_scalar_prefetch=0,
            grid=(n_tiles, B),             # N-tile axis leading for megacore balance
            in_specs=[
                # Per-batch weight (tiny; re-fetched per step, negligible bytes).
                pl.BlockSpec((1,) + w_k.shape[1:], lambda nt, b: (b, 0, 0)),
                # x: per-(n-tile, batch) slab; last tile may be ragged.
                pl.BlockSpec((1, tn, d_in_k), lambda nt, b: (b, nt, 0)),
            ],
            out_specs=pl.BlockSpec((1, tn, d_lane), lambda nt, b: (b, nt, 0)),
        ),
        compiler_params=pltpu.CompilerParams(
            dimension_semantics=("parallel", "parallel"),
            vmem_limit_bytes=32 * 1024 * 1024,
        ),
    )(w_k, x_k)

    if fold > 1:
        out = out.reshape(B, N, dim_out)   # pure row-major view, no HBM pass
    return out


def lowrank_inr_layer_ref(x, v_mat, u_weight):
    """Pure-JAX reference mirroring the PyTorch forward exactly."""
    weight = jnp.einsum("dr,bri->bdi", u_weight, v_mat)   # (b, do, di)
    y = jnp.einsum("bdi,bni->bnd", weight, x)             # (b, n, do)
    return jnp.maximum(y, 0.0)


if __name__ == "__main__":
    key = jax.random.PRNGKey(0)
    k_u, k_b, k_x, k_v, k_x2, k_v2, k_u3, k_x3, k_v3 = jax.random.split(key, 9)

    # --- Config 1: module hyperparameters at small scale (fold path, single tile).
    dim_in, dim_out, rank = 16, 32, 4
    B, N = 2, 8
    bound = 1.0 / (rank ** 0.5)
    # nn.Linear(rank, dim_out)-style init; the bias exists but forward never adds it.
    u_weight = jax.random.uniform(k_u, (dim_out, rank), jnp.float32, -bound, bound)
    _bias = jax.random.uniform(k_b, (dim_out,), jnp.float32, -bound, bound)  # unused
    x = jax.random.normal(k_x, (B, N, dim_in), jnp.float32)
    v_mat = jax.random.normal(k_v, (B, rank, dim_in), jnp.float32)

    out = jax.block_until_ready(lowrank_inr_layer(x, v_mat, u_weight))
    ref = lowrank_inr_layer_ref(x, v_mat, u_weight)
    assert out.shape == (B, N, dim_out)
    assert jnp.allclose(out, ref, atol=1e-4, rtol=1e-4)

    # --- Config 2: multi-tile, ragged last tile (fold path), still small.
    N2 = 200
    x2 = jax.random.normal(k_x2, (B, N2, dim_in), jnp.float32)
    v2 = jax.random.normal(k_v2, (B, rank, dim_in), jnp.float32)
    out2 = jax.block_until_ready(lowrank_inr_layer(x2, v2, u_weight, tn_max=16))
    ref2 = lowrank_inr_layer_ref(x2, v2, u_weight)
    assert jnp.allclose(out2, ref2, atol=1e-4, rtol=1e-4)

    # --- Config 3: dim_out that does not divide 128 (no-fold path, true-dim_out lanes).
    dim_out3 = 40
    u3 = jax.random.uniform(k_u3, (dim_out3, rank), jnp.float32, -bound, bound)
    x3 = jax.random.normal(k_x3, (B, 64, dim_in), jnp.float32)
    v3 = jax.random.normal(k_v3, (B, rank, dim_in), jnp.float32)
    out3 = jax.block_until_ready(lowrank_inr_layer(x3, v3, u3))
    ref3 = lowrank_inr_layer_ref(x3, v3, u3)
    assert jnp.allclose(out3, ref3, atol=1e-4, rtol=1e-4)

    # --- Config 4: bf16 HBM-facing I/O (f32 accumulation in-kernel).
    out_bf16 = jax.block_until_ready(
        lowrank_inr_layer(x, v_mat, u_weight, io_dtype=jnp.bfloat16))
    assert out_bf16.dtype == jnp.bfloat16
    assert jnp.allclose(out_bf16.astype(jnp.float32), ref, atol=1e-1, rtol=5e-2)

    print("KERNEL_OK")
</pallas_src>

<mosaic_0001>
module attributes {stable_mosaic.version = 11 : i64} {
  func.func @kernel(%arg0: i32, %arg1: i32, %arg2: memref<1x64x128xf32, #tpu.memory_space<vmem>>, %arg3: memref<1x2x64xf32, #tpu.memory_space<vmem>>, %arg4: memref<1x2x128xf32, #tpu.memory_space<vmem>>) attributes {dimension_semantics = [#tpu.dimension_semantics<parallel>, #tpu.dimension_semantics<parallel>], iteration_bounds = array<i64: 1, 2>, scalar_prefetch = 0 : i64, scratch_operands = 0 : i64, tpu.core_type = #tpu.core_type<tc>, window_params = [{transform_indices = @transform_0, window_bounds = array<i64: 1, 64, 128>}, {transform_indices = @transform_1, window_bounds = array<i64: 1, 2, 64>}, {transform_indices = @transform_2, window_bounds = array<i64: 1, 2, 128>}]} {
    %c0 = arith.constant 0 : index
    %c0_0 = arith.constant 0 : index
    %c0_1 = arith.constant 0 : index
    %0 = vector.load %arg3[%c0, %c0_0, %c0_1] : memref<1x2x64xf32, #tpu.memory_space<vmem>>, vector<1x2x64xf32>
    %1 = vector.shape_cast %0 : vector<1x2x64xf32> to vector<2x64xf32>
    %c0_2 = arith.constant 0 : index
    %c0_3 = arith.constant 0 : index
    %c0_4 = arith.constant 0 : index
    %2 = vector.load %arg2[%c0_2, %c0_3, %c0_4] : memref<1x64x128xf32, #tpu.memory_space<vmem>>, vector<1x64x128xf32>
    %3 = vector.shape_cast %2 : vector<1x64x128xf32> to vector<64x128xf32>
    %cst = arith.constant dense<0.000000e+00> : vector<2x128xf32>
    %4 = tpu.matmul %1, %3, %cst {dimension_numbers = #tpu.dot_dimension_numbers<[1], [0], [0], [1], [0, 0, 1, 1], [], []>} : vector<2x64xf32>, vector<64x128xf32>, vector<2x128xf32> -> vector<2x128xf32>
    %cst_5 = arith.constant 0.000000e+00 : f32
    %5 = vector.broadcast %cst_5 : f32 to vector<2x128xf32>
    %6 = arith.maximumf %4, %5 : vector<2x128xf32>
    %c0_6 = arith.constant 0 : index
    %c0_7 = arith.constant 0 : index
    %c0_8 = arith.constant 0 : index
    %7 = vector.load %arg4[%c0_6, %c0_7, %c0_8] : memref<1x2x128xf32, #tpu.memory_space<vmem>>, vector<1x2x128xf32>
    %8 = vector.shape_cast %7 : vector<1x2x128xf32> to vector<2x128xf32>
    %9 = vector.shape_cast %6 : vector<2x128xf32> to vector<1x2x128xf32>
    tpu.vector_store %arg4[%c0_6, %c0_7, %c0_8], %9 {strides = array<i32>} : memref<1x2x128xf32, #tpu.memory_space<vmem>>, vector<1x2x128xf32>,
    return
  }
  func.func @transform_0(%arg0: i32, %arg1: i32) -> (i32, i32, i32) {
    %c0_i32 = arith.constant 0 : i32
    %c0_i32_0 = arith.constant 0 : i32
    %c0_i32_1 = arith.constant 0 : i32
    return %arg1, %c0_i32, %c0_i32_0 : i32, i32, i32
  }
  func.func @transform_1(%arg0: i32, %arg1: i32) -> (i32, i32, i32) {
    %c0_i32 = arith.constant 0 : i32
    %c0_i32_0 = arith.constant 0 : i32
    return %arg1, %arg0, %c0_i32 : i32, i32, i32
  }
  func.func @transform_2(%arg0: i32, %arg1: i32) -> (i32, i32, i32) {
    %c0_i32 = arith.constant 0 : i32
    %c0_i32_0 = arith.constant 0 : i32
    return %arg1, %arg0, %c0_i32 : i32, i32, i32
  }
}

</mosaic_0001>

<bundles_post_ra>
// kernel: tpu_custom_call.1
= control target key start
LH: loop header
LB: loop body
LE: loop exit
PB: predicated region body
PF: predicated region fallthrough
CT: control target
= control target key end

     0   :  { %7 = vsyncpa [#allocation3], 0  ;;  %s940_s0 = inlined_call_operand.hbm [shape: f32[2,64,128], index: 0, kind: input, shape index: {}]   ;;  %s941_s1 = inlined_call_operand.hbm [shape: f32[2,2,64], index: 1, kind: input, shape index: {}]   ;;  %s942_s2 = inlined_call_operand.hbm [shape: f32[2,2,128], index: 2, kind: output, shape index: {}]  }
   0x1   :  { %9 = vsyncpa [#allocation3 + $0x1], 0 }
   0x2   :  { %10 = vsyncpa [#allocation6], 0 }
   0x3   :  { %12 = vsyncpa [#allocation6 + $0x1], 0 }
   0x4   :  { %13 = vsyncpa [#allocation4], 0 }
   0x5   :  { %15 = vsyncpa [#allocation4 + $0x1], 0  ;;  %s721_s9 = smov 0   ;;  %s723_s10 = smov 0  }
   0x6   :  { %s725_s11 = smov 0   ;;  %s727_s12 = smov 0  }
   0x7   :  { %s729_s13 = smov 0   ;;  %s731_s14 = smov 0  }
   0x8 LB: > { %s419_s15 = sadd.s32 4294967295, %s696_s14   ;;  %s420_s16 = sadd.s32 4294967294, %s696_s14   ;;  %s696_s14 = sphi %s731_s14, %s21_s14   ;;  %s692_s13 = sphi %s729_s13, %s961_s13   ;;  %s688_s12 = sphi %s727_s12, %s960_s12   ;;  %s684_s11 = sphi %s725_s11, %s959_s11   ;;  %s680_s10 = sphi %s723_s10, %s958_s10   ;;  %s676_s9 = sphi %s721_s9, %s957_s9  }
   0x9   : > { %s30_s17 = sadd.s32 1, %s692_s13  ;;  %s40_s18 = sadd.s32 1, %s684_s11 }
   0xa   : > { %p31_p0 = scmp.ge.s32.totalorder %s30_s17, 2  ;;  %p47_p1 = scmp.ne.s32.totalorder %s684_s11, %s680_s10 }
   0xb   : > { %p48_p2 = scmp.eq.s32.totalorder %s696_s14, 0  ;;  %p53_p3 = scmp.ne.s32.totalorder %s680_s10, %s676_s9 }
   0xc   : > { %s963_s17 = smov (%p31_p0, %s30_s17), 0  ;;  %p54_p5 = scmp.eq.s32.totalorder %s419_s15, 0 }
   0xd   : > { %p762_p4 = por %p48_p2, %p47_p1  ;;  %s37_s20 = ssub.s32 %s692_s13, %s963_s17 }
   0xe   : > { %p107_p6 = scmp.eq.s32.totalorder %s419_s15, 1  ;;  %p38_p7 = scmp.eq.s32.totalorder %s37_s20, 0 }
   0xf   : > { %p768_p8 = por %p54_p5, %p53_p3  ;;  %p113_p10 = scmp.eq.s32.totalorder %s420_s16, 1 }
  0x10   : > { %p772_p9 = por %p107_p6, %p47_p1  ;;  %p495_p13 = scmp.lt.s32.totalorder %s696_s14, 2 }
  0x11   : > { %s946_s21 = scalar_select %p768_p8, 1, 0 }
  0x12   : > { %s947_s22 = scalar_select %p772_p9, 1, 0 }
  0x13   : > { %s777_s23 = scalar_select %p38_p7, %s684_s11, %s40_s18  }
  0x14   : > { %p779_p11 = por %p113_p10, %p53_p3  ;;  %s786_s25 = sand.u32 1, %s684_s11  }
  0x15   : > { %s423_s26 = sshll.u32 %s786_s25, 6  ;;  %s437_s27 = sshll.u32 %s692_s13, 10 }
  0x16   : > { %s948_s24 = scalar_select %p779_p11, 1, 0 }
  0x17   : > { %s793_s30 = scalar_lea.hbm %s940_s0, %s437_s27  ;;  %s137_s3 = scalar_lea.vmem [#allocation2], %s423_s26 }
  0x18   : > { %s144_s4 = sshll.u32 %s137_s3, 4  ;;  %p799_p0 = pnand %p495_p13, %p762_p4  ;;  %s795_s4 = int_to_ptr.vmem [resolvable:$true] %s144_s4 }
  0x19   : > { %s134_s6 = scalar_lea.sflag [#allocation3], %s786_s25  ;;  %s550_s7 = scalar_lea.hbm %s793_s30, 1024 }
  0x1a   : > { %p551_p2 = scmp.ne.s32.totalorder %s793_s30, %s550_s7  ;;  %p552_p3 = pneg %p799_p0 }
  0x1b   : > { %s555_s16 = scalar_lea.hbm %s940_s0, 2048  ;;  %p556_p4 = scmp.lt.u32.totalorder %s793_s30, %s940_s0 }
  0x1c   : > { %p553_p5 = pnand %p552_p3, %p551_p2  ;;  %p557_p7 = scmp.lt.u32.totalorder %s555_s16, %s550_s7 }
  0x1d   : > { %p559_p13 = scmp.lt.u32.totalorder %s550_s7, %s793_s30 }
  0x1e   : > { %p554_p6 = pneg %p553_p5  ;;  %p558_p10 = por %p557_p7, %p556_p4 }
  0x20   : > { %p560_p12 = por %p559_p13, %p558_p10 }
  0x22   : > { %p561_p1 = pnand %p560_p12, %p554_p6 }
  0x24   : > { %564 = shalt.err (!%p561_p1)
}
  0x25   : > { %s565_s20 = scalar_lea.vmem %s795_s4, 1024  ;;  %s698_s26 = smov [#allocation2]  }
  0x26   : > { %p566_p2 = scmp.ne.s32.totalorder %s795_s4, %s565_s20  ;;  %s570_s27 = sshll.u32 %s698_s26, 4  ;;  %s571_s27 = int_to_ptr.vmem [resolvable:$false] %s570_s27 }
  0x27   : > { %s572_s28 = scalar_lea.vmem %s571_s27, 2048  ;;  %p573_p9 = scmp.lt.s32.totalorder %s795_s4, %s571_s27 }
  0x28   : > { %p568_p5 = pnand %p566_p2, %p552_p3  ;;  %p574_p4 = scmp.lt.s32.totalorder %s572_s28, %s565_s20 }
  0x2a   : > { %p569_p11 = pneg %p568_p5  ;;  %p575_p7 = por %p574_p4, %p573_p9 }
  0x2c   : > { %p576_p10 = pnand %p575_p7, %p569_p11 }
  0x2e   : > { %579 = shalt.err (!%p576_p10)
}
  0x2f   : > { %s699_s29 = smov 128   ;;  %s700_s3 = smov 8  }
  0x30   : > { %487 = dma.hbm_to_vmem [thread:$0]  (!%p799_p0), %s793_s30, 1024, %s795_s4, %s134_s6, %s699_s29, %s699_s29, %s700_s3  }
  0x31   : > { %p171_p12 = scmp.lt.s32.totalorder %s696_s14, 3  ;;  %s426_s7 = sshll.u32 %s786_s25, 1 }
  0x32   : > { %s427_s8 = sshll.u32 %s692_s13, 5  ;;  %p950_p9 = scmp.ge.s32.totalorder %s696_s14, 1 }
  0x33   : > { %s844_s19 = scalar_lea.hbm %s941_s1, %s427_s8  ;;  %s158_s20 = scalar_lea.vmem [#allocation5], %s426_s7 }
  0x34   : > { %p837_p11 = pnand %p950_p9, %p171_p12  ;;  %s166_s26 = sshll.u32 %s158_s20, 4  ;;  %s167_s26 = int_to_ptr.vmem [resolvable:$true] %s166_s26 }
  0x35   : > { %s155_s30 = scalar_lea.sflag [#allocation6], %s786_s25  ;;  %s580_s4 = scalar_lea.hbm %s844_s19, 32 }
  0x36   : > { %s951_s15 = scalar_select %p837_p11, 1, 0 }
  0x37   : > { %p581_p1 = scmp.ne.s32.totalorder %s844_s19, %s580_s4  ;;  %s585_s28 = scalar_lea.hbm %s941_s1, 64 }
  0x38   : > { %p586_p2 = scmp.lt.u32.totalorder %s844_s19, %s941_s1  ;;  %p587_p5 = scmp.lt.u32.totalorder %s585_s28, %s580_s4 }
  0x39   : > { %p583_p6 = pnand %p581_p1, %p552_p3  ;;  %p589_p7 = scmp.lt.u32.totalorder %s580_s4, %s844_s19 }
  0x3a   : > { %p588_p4 = por %p587_p5, %p586_p2 }
  0x3b   : > { %p584_p13 = pneg %p583_p6 }
  0x3c   : > { %p590_p10 = por %p589_p7, %p588_p4 }
  0x3e   : > { %p591_p12 = pnand %p590_p10, %p584_p13 }
  0x40   : > { %594 = shalt.err (!%p591_p12)
}
  0x41   : > { %s595_s25 = scalar_lea.vmem %s167_s26, 32  ;;  %s701_s7 = smov [#allocation5]  }
  0x42   : > { %p596_p9 = scmp.ne.s32.totalorder %s167_s26, %s595_s25  ;;  %s600_s8 = sshll.u32 %s701_s7, 4  ;;  %s601_s8 = int_to_ptr.vmem [resolvable:$false] %s600_s8 }
  0x43   : > { %s602_s16 = scalar_lea.vmem %s601_s8, 64  ;;  %p603_p8 = scmp.lt.s32.totalorder %s167_s26, %s601_s8 }
  0x44   : > { %p598_p1 = pnand %p596_p9, %p552_p3  ;;  %p604_p11 = scmp.lt.s32.totalorder %s602_s16, %s595_s25 }
  0x46   : > { %p599_p6 = pneg %p598_p1  ;;  %p605_p2 = por %p604_p11, %p603_p8 }
  0x48   : > { %p606_p5 = pnand %p605_p2, %p599_p6 }
  0x4a   : > { %609 = shalt.err (!%p606_p5)
}
  0x4b   : > { %490 = dma.hbm_to_vmem [thread:$0]  (!%p799_p0), %s844_s19, 32, %s167_s26, %s155_s30  }
  0x4c   : > { %p952_p13 = scmp.ne.s32.totalorder %s951_s15, 0 }
  0x4d   : > { %s869_s18 = sand.u32 (!%p952_p13), 1, %s680_s10   ;;  %p953_p3 = scmp.ne.s32.totalorder (!%p952_p13), %s946_s21, 0 }
  0x4e   : > { %175 = sbr.rel (%p952_p13) target bundleno = 335 (0x14f), region = 28  ;;  %s429_s20 = sshll.u32 (!%p952_p13), %s869_s18, 6 }
  0x4f   : > { %s178_s4 = scalar_lea.sflag (!%p952_p13), [#allocation3], %s869_s18  ;;  %s181_s6 = scalar_lea.vmem (!%p952_p13), [#allocation2], %s429_s20 }
  0x55   : > { %663 = dma.done.wait (%p953_p3), %s178_s4, 1024  }
  0x56   : > { %665 = vsyncadd (%p953_p3), %s178_s4, 4294966272  ;;  %s430_s5 = sshll.u32 %s869_s18, 1  ;;  %s187_s15 = scalar_lea.sflag [#allocation6], %s869_s18 }
  0x57   : > { %s190_s19 = scalar_lea.vmem [#allocation5], %s430_s5 }
  0x58   : > { %667 = dma.done.wait (%p953_p3), %s187_s15, 32  }
  0x59   : > { %669 = vsyncadd (%p953_p3), %s187_s15, 4294967264  ;;  %v702_v0 = vmov 0.0|0.0   ;;  %vm703_vm0 = vmmov 0   ;;  %v704_v1 = vmov 0.0   ;;  %v217_v2 = vld [vmem:[%s181_s6] sm:$0xff]  ;;  %v218_v3 = vld [vmem:[%s181_s6 + $0x8] sm:$0xff] }
  0x5a   : > { %466 = vmatprep.subr.bf16.mxu0 %v702_v0  ;;  %463 = vmatprep.mubr.msk.f32.mxu0 %vm703_vm0, %v704_v1  ;;  %v219_v4 = vld [vmem:[%s181_s6 + $0x10] sm:$0xff]  ;;  %v467_v5 = vpack.c.bf16 %v218_v3, %v217_v2  ;;  %v220_v6 = vld [vmem:[%s181_s6 + $0x18] sm:$0xff]  ;;  %v221_v8 = vld [vmem:[%s181_s6 + $0x20] sm:$0xff]  ;;  %vm225_vm1 = vcmask 523264   ;;  %s434_s21 = sshll.u32 %s688_s12, 5  ;;  %s215_s26 = scalar_lea.vmem [#allocation7], %s430_s5 }
  0x5b   : > { %v470_v7 = vpack.c.bf16 %v220_v6, %v219_v4  ;;  %v222_v9 = vld [vmem:[%s181_s6 + $0x28] sm:$0xff]  ;;  %v223_v11 = vld [vmem:[%s181_s6 + $0x30] sm:$0xff]  ;;  %v224_v12 = vld [vmem:[%s181_s6 + $0x38] sm:$0xff]  ;;  %s316_s30 = sshll.u32 %s215_s26, 4  ;;  %s891_s29 = scalar_lea.hbm %s942_s2, %s434_s21  ;;  %s893_s30 = int_to_ptr.vmem [resolvable:$true] %s316_s30 }
  0x5c   : > { %468 = vmatpush3.bf16.msra.mxu0 %v467_v5  ;;  %v473_v10 = vpack.c.bf16 %v222_v9, %v221_v8  ;;  %v476_v13 = vpack.c.bf16 %v224_v12, %v223_v11  ;;  %v216_v14 = vld [vmem:[%s190_s19] sm:$0x3]  ;;  %s302_s3 = scalar_lea.sflag [#allocation4], %s869_s18  ;;  %s610_s25 = scalar_lea.vmem %s893_s30, 32 }
  0x5d   : > { %469 = vmatprep.subr.bf16.mxu0 %v702_v0  ;;  %p611_p8 = scmp.ne.s32.totalorder %s893_s30, %s610_s25  ;;  %p954_p0 = scmp.ne.s32.totalorder %s947_s22, 0 }
  0x5e   : > { %s705_s12 = smov [#allocation7]  }
  0x5f   : > { %p612_p11 = pnand %p611_p8, %p954_p0  ;;  %s614_s7 = sshll.u32 %s705_s12, 4  ;;  %s615_s7 = int_to_ptr.vmem [resolvable:$false] %s614_s7 }
  0x60   : > { %471 = vmatpush3.bf16.msra.mxu0 %v470_v7  ;;  %s616_s8 = scalar_lea.vmem %s615_s7, 64  ;;  %p617_p7 = scmp.lt.s32.totalorder %s893_s30, %s615_s7 }
  0x61   : > { %472 = vmatprep.subr.bf16.mxu0 %v702_v0  ;;  %p613_p4 = pneg %p612_p11  ;;  %p618_p10 = scmp.lt.s32.totalorder %s616_s8, %s610_s25 }
  0x63   : > { %p619_p12 = por %p618_p10, %p617_p7 }
  0x64   : > { %474 = vmatpush3.bf16.msra.mxu0 %v473_v10 }
  0x65   : > { %475 = vmatprep.subr.bf16.mxu0 %v702_v0  ;;  %p620_p9 = pnand %p619_p12, %p613_p4 }
  0x68   : > { %477 = vmatpush3.bf16.msra.mxu0 %v476_v13 }
  0x6b   : > { %464 = vmatmul.mubr.msk.f32.vlgmr.msra.gmra.mrb[0].mxu0 %vm225_vm1, %v216_v14 }
 0x13e   : > { %v295_v15 = vpop.f32.mrb[0].mxu0 }
 0x13f   : > { %v299_v16 = vmax.f32 %v295_v15, 0.0  ;;  %v465_v17 = vpop.f32.mrb[1].mxu0 }
 0x141   : > { %300 = vst [vmem:[%s215_s26] sm:$0x3] %v299_v16 }
 0x142   : > { %623 = shalt.err (!%p620_p9)
}
 0x143   : > { %s624_s16 = scalar_lea.hbm %s891_s29, 32  ;;  %s628_s4 = scalar_lea.hbm %s942_s2, 64 }
 0x144   : > { %p625_p1 = scmp.ne.s32.totalorder %s891_s29, %s624_s16  ;;  %p629_p5 = scmp.lt.u32.totalorder %s891_s29, %s942_s2 }
 0x145   : > { %p630_p13 = scmp.lt.u32.totalorder %s628_s4, %s624_s16  ;;  %p632_p8 = scmp.lt.u32.totalorder %s624_s16, %s891_s29 }
 0x146   : > { %p626_p6 = pnand %p625_p1, %p954_p0 }
 0x147   : > { %p631_p3 = por %p630_p13, %p629_p5 }
 0x148   : > { %p627_p2 = pneg %p626_p6 }
 0x149   : > { %p633_p11 = por %p632_p8, %p631_p3 }
 0x14b   : > { %p634_p4 = pnand %p633_p11, %p627_p2 }
 0x14d   : > { %637 = shalt.err (!%p634_p4)
}
 0x14e   : > { %482 = dma.vmem_to_hbm [thread:$0]  (%p954_p0), %s893_s30, 32, %s891_s29, %s302_s3  }
 0x14f PF: > { %s328_s15 = sand.u32 1, %s676_s9   ;;  %p955_p7 = scmp.ne.s32.totalorder %s948_s24, 0 }
 0x150   : > { %p956_p10 = scmp.ge.s32.totalorder %s696_s14, 2  ;;  %s329_s19 = scalar_lea.sflag [#allocation4], %s328_s15 }
 0x152   : > { %p492_p12 = pnand %p956_p10, %p955_p7 }
 0x154   : > { %671 = dma.done.wait (!%p492_p12), %s329_s19, 32  }
 0x155   : > { %673 = vsyncadd (!%p492_p12), %s329_s19, 4294967264  ;;  %s21_s14 = sadd.s32 1, %s696_s14   ;;  %s957_s9 = smov %s680_s10 }
 0x156   : > { %p18_p9 = scmp.ge.s32.totalorder %s21_s14, 4   ;;  %s958_s10 = smov %s684_s11 }
 0x157   : > { %s959_s11 = smov %s777_s23  ;;  %s960_s12 = smov %s692_s13 }
 0x158   : > { %s961_s13 = smov %s963_s17  ;;  %20 = sbr.rel (!%p18_p9) target bundleno = 8 (0x8), region = 86 }
 0x15f   :  { %334 = vsyncpa [#allocation3], 1 }
 0x160   :  { %336 = vsyncpa [#allocation3 + $0x1], 1 }
 0x161   :  { %337 = vsyncpa [#allocation6], 1 }
 0x162   :  { %339 = vsyncpa [#allocation6 + $0x1], 1 }
 0x163   :  { %340 = vsyncpa [#allocation4], 1 }
 0x164   :  { %342 = vsyncpa [#allocation4 + $0x1], 1 }

</bundles_post_ra>
